<compile_context>
chip_gen: v7x
topology: tpu7x:2x2x1
jax: 0.10.0
libtpu: 0.0.40
codegen_flags: <defaults>
</compile_context>

<pallas_src>
import jax
import jax.numpy as jnp
from jax.experimental import pallas as pl
from jax.experimental.pallas import tpu as pltpu


def _scse_apply_kernel(x_ref, cse_ref, ws_ref, bs_ref, o_ref):
    # x_ref  : (1, C, THW) spatial tile of one batch element
    # cse_ref: (1, C, 1)   precomputed channel gate for this batch element
    # ws_ref : (C, 1) [small C, VPU path] or (1, C) [large C, MXU path]
    # bs_ref : (1,) scalar bias in SMEM
    x = x_ref[0].astype(jnp.float32)            # (C, THW)
    cse = cse_ref[0].astype(jnp.float32)        # (C, 1)
    ws = ws_ref[...].astype(jnp.float32)
    bs = bs_ref[0]

    # ---------------- sSE path: 1x1 conv C -> 1 over this spatial tile --------
    if ws_ref.shape[0] == 1:
        # Large C: (1, C) @ (C, THW) on the otherwise-idle MXU.
        s = jnp.dot(ws, x, preferred_element_type=jnp.float32)      # (1, THW)
    else:
        # Small C: broadcast-multiply + sublane reduction (VPU/XLU).
        s = jnp.sum(ws * x, axis=0, keepdims=True)                  # (1, THW)
    s = jax.nn.sigmoid(s + bs)                                      # (1, THW)

    # ---------------- combine: x*cse + x*s == x*(cse + s) ---------------------
    o_ref[0] = (x * (cse + s)).astype(o_ref.dtype)


def _round_up(a, b):
    return (a + b - 1) // b * b


def scse_pallas(x_nchw, params, *, target_block_bytes=1 << 20,
                vmem_limit_bytes=32 * 1024 * 1024):
    """x_nchw: (N, C, H, W) float32 (or bfloat16). params: (w1, b1, w2, b2, ws, bs)
    with PyTorch 1x1-conv-equivalent shapes w1:(mid,C) b1:(mid,) w2:(C,mid)
    b2:(C,) ws:(C,) bs:()."""
    w1, b1, w2, b2, ws, bs = params
    N, C, H, W = x_nchw.shape
    HW = H * W
    x2 = x_nchw.reshape(N, C, HW)

    # ---- cSE gate: tiny O(N*C*mid) MLP, computed in plain JAX (f32) ----------
    avg = jnp.mean(x2.astype(jnp.float32), axis=2)                  # (N, C)
    z = jnp.maximum(avg @ w1.astype(jnp.float32).T + b1, 0.0)       # (N, mid)
    cse = jax.nn.sigmoid(z @ w2.astype(jnp.float32).T + b2)         # (N, C)
    cse = cse[:, :, None].astype(jnp.float32)                       # (N, C, 1)

    # ---- choose a lane-dense spatial tile (~1 MiB, multiple of 128) ----------
    LANE = 128
    itemsize = x2.dtype.itemsize
    hw_lane = _round_up(HW, LANE)
    thw = max(LANE, (target_block_bytes // (C * itemsize)) // LANE * LANE)
    thw = min(thw, hw_lane)
    hwp = _round_up(HW, thw)
    if hwp != HW:
        # Pad spatial axis so every tile is full and 128-aligned (unmasked vst).
        x2 = jnp.pad(x2, ((0, 0), (0, 0), (0, hwp - HW)))
    n_tiles = hwp // thw

    # sSE weight layout picked once (statically) for the kernel's compute path.
    ws_k = ws.reshape(1, C) if C >= 128 else ws.reshape(C, 1)
    bs_k = jnp.asarray(bs, jnp.float32).reshape(1)

    out = pl.pallas_call(
        _scse_apply_kernel,
        out_shape=jax.ShapeDtypeStruct((N, C, hwp), x2.dtype),
        grid_spec=pltpu.PrefetchScalarGridSpec(
            num_scalar_prefetch=0,
            grid=(N, n_tiles),
            in_specs=[
                pl.BlockSpec((1, C, thw), lambda n, t: (n, 0, t)),   # x tile
                pl.BlockSpec((1, C, 1), lambda n, t: (n, 0, 0)),     # cse gate
                pl.BlockSpec(ws_k.shape, lambda n, t: (0, 0)),       # sSE weight
                pl.BlockSpec(memory_space=pltpu.MemorySpace.SMEM),   # sSE bias
            ],
            out_specs=pl.BlockSpec((1, C, thw), lambda n, t: (n, 0, t)),
        ),
        compiler_params=pltpu.CompilerParams(
            dimension_semantics=("parallel", "parallel"),
            vmem_limit_bytes=vmem_limit_bytes,
        ),
    )(x2, cse, ws_k, bs_k)

    return out[:, :, :HW].reshape(N, C, H, W)


def scse_reference(x_nchw, params):
    """Pure-JAX reference with identical semantics (NCHW, 1x1 convs)."""
    w1, b1, w2, b2, ws, bs = params
    avg = jnp.mean(x_nchw, axis=(2, 3))                             # (N, C)
    z = jnp.maximum(avg @ w1.T + b1, 0.0)                           # (N, mid)
    cse = jax.nn.sigmoid(z @ w2.T + b2)                             # (N, C)
    s = jax.nn.sigmoid(jnp.einsum("nchw,c->nhw", x_nchw, ws) + bs)  # (N, H, W)
    return (x_nchw * cse[:, :, None, None]
            + x_nchw * s[:, None, :, :])


def init_params(key, in_channels, reduction=16):
    mid = max(in_channels // reduction, 1)
    ks = jax.random.split(key, 6)
    # PyTorch Conv2d weights are (out, in, 1, 1); we store the 2-D slices.
    w1 = jax.random.normal(ks[0], (mid, in_channels), jnp.float32) * 0.2
    b1 = jax.random.normal(ks[1], (mid,), jnp.float32) * 0.1
    w2 = jax.random.normal(ks[2], (in_channels, mid), jnp.float32) * 0.2
    b2 = jax.random.normal(ks[3], (in_channels,), jnp.float32) * 0.1
    ws = jax.random.normal(ks[4], (in_channels,), jnp.float32) * 0.2
    bs = jax.random.normal(ks[5], (), jnp.float32) * 0.1
    return (w1, b1, w2, b2, ws, bs)


if __name__ == "__main__":
    N, C, H, W = 2, 32, 16, 16          # in_channels=32, reduction=16 -> mid=2
    key = jax.random.PRNGKey(0)
    kx, kp = jax.random.split(key)
    x = jax.random.normal(kx, (N, C, H, W), jnp.float32)
    params = init_params(kp, C, reduction=16)

    out = scse_pallas(x, params)
    out = jax.block_until_ready(out)

    ref = scse_reference(x, params)
    assert out.shape == (N, C, H, W)
    assert jnp.allclose(out, ref, atol=1e-5, rtol=1e-5), "mismatch vs reference"

    print("KERNEL_OK")
</pallas_src>

<mosaic_0001>
module attributes {stable_mosaic.version = 11 : i64} {
  func.func @_scse_apply_kernel(%arg0: i32, %arg1: i32, %arg2: memref<1x32x256xf32, #tpu.memory_space<vmem>>, %arg3: memref<1x32x1xf32, #tpu.memory_space<vmem>>, %arg4: memref<32x1xf32, #tpu.memory_space<vmem>>, %arg5: memref<1xf32, #tpu.memory_space<smem>>, %arg6: memref<1x32x256xf32, #tpu.memory_space<vmem>>) attributes {dimension_semantics = [#tpu.dimension_semantics<parallel>, #tpu.dimension_semantics<parallel>], iteration_bounds = array<i64: 2, 1>, scalar_prefetch = 0 : i64, scratch_operands = 0 : i64, tpu.core_type = #tpu.core_type<tc>, window_params = [{transform_indices = @transform_0, window_bounds = array<i64: 1, 32, 256>}, {transform_indices = @transform_1, window_bounds = array<i64: 1, 32, 1>}, {pipeline_mode = #tpu.pipeline_mode<synchronous>, transform_indices = @transform_2, window_bounds = array<i64: 32, 1>}, {transform_indices = @transform_3, window_bounds = array<i64: 1>}, {transform_indices = @transform_4, window_bounds = array<i64: 1, 32, 256>}]} {
    %c0 = arith.constant 0 : index
    %c0_0 = arith.constant 0 : index
    %c0_1 = arith.constant 0 : index
    %0 = vector.load %arg2[%c0, %c0_0, %c0_1] : memref<1x32x256xf32, #tpu.memory_space<vmem>>, vector<1x32x256xf32>
    %1 = vector.shape_cast %0 : vector<1x32x256xf32> to vector<32x256xf32>
    %c0_2 = arith.constant 0 : index
    %c0_3 = arith.constant 0 : index
    %c0_4 = arith.constant 0 : index
    %2 = vector.load %arg3[%c0_2, %c0_3, %c0_4] : memref<1x32x1xf32, #tpu.memory_space<vmem>>, vector<1x32x1xf32>
    %3 = vector.shape_cast %2 : vector<1x32x1xf32> to vector<32x1xf32>
    %c0_5 = arith.constant 0 : index
    %c0_6 = arith.constant 0 : index
    %4 = vector.load %arg4[%c0_5, %c0_6] : memref<32x1xf32, #tpu.memory_space<vmem>>, vector<32x1xf32>
    %c0_7 = arith.constant 0 : index
    %5 = memref.load %arg5[%c0_7] : memref<1xf32, #tpu.memory_space<smem>>
    %6 = vector.broadcast %4 : vector<32x1xf32> to vector<32x256xf32>
    %7 = arith.mulf %6, %1 : vector<32x256xf32>
    %cst = arith.constant dense<0.000000e+00> : vector<256xf32>
    %8 = vector.multi_reduction <add>, %7, %cst [0] : vector<32x256xf32> to vector<256xf32>
    %9 = vector.shape_cast %8 : vector<256xf32> to vector<1x256xf32>
    %10 = vector.broadcast %5 : f32 to vector<1x256xf32>
    %11 = arith.addf %9, %10 : vector<1x256xf32>
    %12 = arith.negf %11 : vector<1x256xf32>
    %13 = math.exp %12 : vector<1x256xf32>
    %cst_8 = arith.constant 1.000000e+00 : f32
    %14 = vector.broadcast %cst_8 : f32 to vector<1x256xf32>
    %15 = arith.addf %14, %13 : vector<1x256xf32>
    %16 = arith.divf %14, %15 : vector<1x256xf32>
    %17 = vector.broadcast %3 : vector<32x1xf32> to vector<32x256xf32>
    %18 = vector.broadcast %16 : vector<1x256xf32> to vector<32x256xf32>
    %19 = arith.addf %17, %18 : vector<32x256xf32>
    %20 = arith.mulf %1, %19 : vector<32x256xf32>
    %c0_9 = arith.constant 0 : index
    %c0_10 = arith.constant 0 : index
    %c0_11 = arith.constant 0 : index
    %21 = vector.load %arg6[%c0_9, %c0_10, %c0_11] : memref<1x32x256xf32, #tpu.memory_space<vmem>>, vector<1x32x256xf32>
    %22 = vector.shape_cast %21 : vector<1x32x256xf32> to vector<32x256xf32>
    %23 = vector.shape_cast %20 : vector<32x256xf32> to vector<1x32x256xf32>
    tpu.vector_store %arg6[%c0_9, %c0_10, %c0_11], %23 {strides = array<i32>} : memref<1x32x256xf32, #tpu.memory_space<vmem>>, vector<1x32x256xf32>,
    return
  }
  func.func @transform_0(%arg0: i32, %arg1: i32) -> (i32, i32, i32) {
    %c0_i32 = arith.constant 0 : i32
    %c0_i32_0 = arith.constant 0 : i32
    return %arg0, %c0_i32, %arg1 : i32, i32, i32
  }
  func.func @transform_1(%arg0: i32, %arg1: i32) -> (i32, i32, i32) {
    %c0_i32 = arith.constant 0 : i32
    %c0_i32_0 = arith.constant 0 : i32
    %c0_i32_1 = arith.constant 0 : i32
    return %arg0, %c0_i32, %c0_i32_0 : i32, i32, i32
  }
  func.func @transform_2(%arg0: i32, %arg1: i32) -> (i32, i32) {
    %c0_i32 = arith.constant 0 : i32
    %c0_i32_0 = arith.constant 0 : i32
    %c0_i32_1 = arith.constant 0 : i32
    return %c0_i32, %c0_i32_0 : i32, i32
  }
  func.func @transform_3(%arg0: i32, %arg1: i32) -> i32 {
    %c0_i32 = arith.constant 0 : i32
    %c0_i32_0 = arith.constant 0 : i32
    return %c0_i32 : i32
  }
  func.func @transform_4(%arg0: i32, %arg1: i32) -> (i32, i32, i32) {
    %c0_i32 = arith.constant 0 : i32
    %c0_i32_0 = arith.constant 0 : i32
    return %arg0, %c0_i32, %arg1 : i32, i32, i32
  }
}

</mosaic_0001>

<bundles_post_ra>
// kernel: tpu_custom_call.1
= control target key start
LH: loop header
LB: loop body
LE: loop exit
PB: predicated region body
PF: predicated region fallthrough
CT: control target
= control target key end

     0   :  { %s972_s0 = inlined_call_operand.hbm [shape: f32[2,32,256], index: 0, kind: input, shape index: {}]   ;;  %s973_s1 = inlined_call_operand.vmem [shape: f32[2,32,1], index: 1, kind: input, shape index: {}]   ;;  %s974_s2 = inlined_call_operand.vmem [shape: f32[32,1], index: 2, kind: input, shape index: {}]   ;;  %s975_s3 = inlined_call_operand.<no memory space> [shape: f32[1], index: 3, kind: input, shape index: {}]   ;;  %s976_s4 = inlined_call_operand.hbm [shape: f32[2,32,256], index: 4, kind: output, shape index: {}]  }
   0x1   :  { %9 = sst [smem:[#allocation2]] %s975_s3 }
   0x2   :  { %10 = vsyncpa [#allocation4], 0 }
   0x3   :  { %12 = vsyncpa [#allocation4 + $0x1], 0 }
   0x4   :  { %13 = vsyncpa [#allocation5], 0 }
   0x5   :  { %15 = vsyncpa [#allocation5 + $0x1], 0  ;;  %s742_s17 = smov 0   ;;  %s744_s18 = smov 0  }
   0x6   :  { %s746_s19 = smov 0   ;;  %s748_s20 = smov 0  }
   0x7   :  { %s750_s21 = smov 0   ;;  %s752_s22 = smov 0  }
   0x8 LB: > { %s494_s3 = sadd.s32 4294967295, %s705_s22   ;;  %s495_s23 = sadd.s32 4294967294, %s705_s22   ;;  %s705_s22 = sphi %s752_s22, %s21_s22   ;;  %s701_s21 = sphi %s750_s21, %s991_s21   ;;  %s697_s20 = sphi %s748_s20, %s990_s20   ;;  %s693_s19 = sphi %s746_s19, %s989_s19   ;;  %s689_s18 = sphi %s744_s18, %s988_s18   ;;  %s685_s17 = sphi %s742_s17, %s987_s17  }
   0x9   : > { %s33_s24 = sadd.s32 1, %s701_s21  ;;  %s42_s25 = sadd.s32 1, %s693_s19 }
   0xa   : > { %p35_p0 = scmp.ge.s32.totalorder %s33_s24, 2  ;;  %p49_p1 = scmp.ne.s32.totalorder %s693_s19, %s689_s18 }
   0xb   : > { %p50_p2 = scmp.eq.s32.totalorder %s705_s22, 0  ;;  %p55_p3 = scmp.ne.s32.totalorder %s689_s18, %s685_s17 }
   0xc   : > { %s993_s24 = smov (%p35_p0, %s33_s24), 0  ;;  %p56_p5 = scmp.eq.s32.totalorder %s494_s3, 0 }
   0xd   : > { %p783_p4 = por %p50_p2, %p49_p1  ;;  %s37_s27 = ssub.s32 %s701_s21, %s993_s24 }
   0xe   : > { %p149_p6 = scmp.eq.s32.totalorder %s494_s3, 1  ;;  %p40_p7 = scmp.eq.s32.totalorder %s37_s27, 0 }
   0xf   : > { %p789_p8 = por %p56_p5, %p55_p3  ;;  %p155_p10 = scmp.eq.s32.totalorder %s495_s23, 1 }
  0x10   : > { %p793_p9 = por %p149_p6, %p49_p1  ;;  %p528_p13 = scmp.lt.s32.totalorder %s705_s22, 2 }
  0x11   : > { %s798_s30 = scalar_select %p40_p7, %s693_s19, %s42_s25  }
  0x12   : > { %s980_s29 = scalar_select %p793_p9, 1, 0 }
  0x13   : > { %p800_p11 = por %p155_p10, %p55_p3  ;;  %s181_s6 = sand.u32 1, %s693_s19  }
  0x14   : > { %s498_s7 = sshll.u32 %s181_s6, 6  ;;  %s513_s8 = sshll.u32 %s701_s21, 10 }
  0x15   : > { %s981_s5 = scalar_select %p800_p11, 1, 0 }
  0x16   : > { %s811_s11 = scalar_lea.hbm %s972_s0, %s513_s8  ;;  %s185_s12 = scalar_lea.vmem [#allocation3], %s498_s7 }
  0x17   : > { %s194_s13 = sshll.u32 %s185_s12, 4  ;;  %p817_p0 = pnand %p528_p13, %p783_p4  ;;  %s813_s13 = int_to_ptr.vmem [resolvable:$true] %s194_s13 }
  0x18   : > { %s822_s15 = scalar_lea.sflag [#allocation4], %s181_s6  ;;  %s593_s16 = scalar_lea.hbm %s811_s11, 1024 }
  0x19   : > { %p594_p2 = scmp.ne.s32.totalorder %s811_s11, %s593_s16  ;;  %p595_p3 = pneg %p817_p0 }
  0x1a   : > { %s598_s25 = scalar_lea.hbm %s972_s0, 2048  ;;  %p599_p4 = scmp.lt.u32.totalorder %s811_s11, %s972_s0 }
  0x1b   : > { %p596_p5 = pnand %p595_p3, %p594_p2  ;;  %p600_p7 = scmp.lt.u32.totalorder %s598_s25, %s593_s16 }
  0x1c   : > { %p602_p13 = scmp.lt.u32.totalorder %s593_s16, %s811_s11 }
  0x1d   : > { %p597_p6 = pneg %p596_p5  ;;  %p601_p10 = por %p600_p7, %p599_p4 }
  0x1f   : > { %p603_p12 = por %p602_p13, %p601_p10 }
  0x21   : > { %p604_p1 = pnand %p603_p12, %p597_p6 }
  0x23   : > { %607 = shalt.err (!%p604_p1)
}
  0x24   : > { %s608_s6 = scalar_lea.vmem %s813_s13, 1024  ;;  %s707_s7 = smov [#allocation3]  }
  0x25   : > { %p609_p2 = scmp.ne.s32.totalorder %s813_s13, %s608_s6  ;;  %s613_s8 = sshll.u32 %s707_s7, 4  ;;  %s614_s8 = int_to_ptr.vmem [resolvable:$false] %s613_s8 }
  0x26   : > { %s615_s9 = scalar_lea.vmem %s614_s8, 2048  ;;  %p616_p9 = scmp.lt.s32.totalorder %s813_s13, %s614_s8 }
  0x27   : > { %p611_p5 = pnand %p609_p2, %p595_p3  ;;  %p617_p4 = scmp.lt.s32.totalorder %s615_s9, %s608_s6 }
  0x29   : > { %p612_p11 = pneg %p611_p5  ;;  %p618_p7 = por %p617_p4, %p616_p9 }
  0x2b   : > { %p619_p10 = pnand %p618_p7, %p612_p11 }
  0x2d   : > { %622 = shalt.err (!%p619_p10)
}
  0x2e   : > { %s708_s10 = smov 256   ;;  %s709_s12 = smov 16  }
  0x2f   : > { %523 = dma.hbm_to_vmem [thread:$0]  (!%p817_p0), %s811_s11, 1024, %s813_s13, %s822_s15, %s708_s10, %s708_s10, %s709_s12  }
  0x30   : > { %p210_p12 = scmp.lt.s32.totalorder %s705_s22, 3  ;;  %p983_p1 = scmp.ge.s32.totalorder %s705_s22, 1 }
  0x32   : > { %p211_p3 = pnand %p983_p1, %p210_p12 }
  0x33   : > { %s854_s16 = sand.u32 (!%p211_p3), 1, %s689_s18  }
  0x34   : > { %214 = sbr.rel (%p211_p3) target bundleno = 264 (0x108), region = 36  ;;  %s502_s3 = sshll.u32 (!%p211_p3), %s854_s16, 6 }
  0x35   : > { %s217_s23 = scalar_lea.sflag (!%p211_p3), [#allocation4], %s854_s16  ;;  %s860_s25 = scalar_lea.vmem (!%p211_p3), [#allocation3], %s502_s3 }
  0x3b   : > { %676 = dma.done.wait (%p789_p8), %s217_s23, 1024  }
  0x3c   : > { %678 = vsyncadd (%p789_p8), %s217_s23, 4294966272  ;;  %p251_p9 = scmp.lt.s32.totalorder %s697_s20, 1  ;;  %v710_v0 = vmov 0   ;;  %v271_v1 = vld [vmem:[%s974_s2 + $0x10] sm:$0xff]  ;;  %v269_v2 = vld [vmem:[%s974_s2] sm:$0xff]  ;;  %s273_s23 = sld [smem:[#allocation2]] }
  0x3d   : > { %584 = vset.pattern.permute.xlu1 %v710_v0  ;;  %583 = vset.pattern.permute.xlu0 %v710_v0  ;;  %v272_v3 = vld [vmem:[%s974_s2 + $0x18] sm:$0xff]  ;;  %v270_v4 = vld [vmem:[%s974_s2 + $0x8] sm:$0xff]  ;;  %v884_v11 = vld [vmem:[%s860_s25] sm:$0xff]  ;;  %s380_s15 = scalar_lea.sflag [#allocation5], %s854_s16  ;;  %p984_p11 = scmp.ne.s32.totalorder %s980_s29, 0 }
  0x3e   : > { %s252_s11 = scalar_select %p251_p9, %s697_s20, 1  ;;  %286 = vperm.xlu1 %584, %v271_v1   ;;  %276 = vperm.xlu0 %583, %v269_v2   ;;  %v887_v12 = vld [vmem:[%s860_s25 + $0x8] sm:$0xff]  ;;  %v890_v13 = vld [vmem:[%s860_s25 + $0x10] sm:$0xff]  ;;  %v893_v14 = vld [vmem:[%s860_s25 + $0x18] sm:$0xff] }
  0x3f   : > { %v896_v15 = vld [vmem:[%s860_s25 + $0x20] sm:$0xff]  ;;  %v899_v16 = vld [vmem:[%s860_s25 + $0x28] sm:$0xff]  ;;  %v263_v23 = vld [vmem:[%s860_s25 + $0x30] sm:$0xff] }
  0x40   : > { %s514_s27 = sshll.u32 %s252_s11, 5  ;;  %v264_v24 = vld [vmem:[%s860_s25 + $0x38] sm:$0xff]  ;;  %s515_s25 = sshll.u32 %s697_s20, 10 }
  0x41   : > { %s255_s12 = scalar_lea.vmem %s973_s1, %s514_s27  ;;  %s249_s11 = scalar_lea.vmem [#allocation6], %s502_s3 }
  0x42   : > { %291 = vperm.xlu1 %584, %v272_v3   ;;  %281 = vperm.xlu0 %583, %v270_v4   ;;  %v266_v5 = vld [vmem:[%s255_s12 + $0x8] sm:$0xff]  ;;  %v265_v6 = vld [vmem:[%s255_s12] sm:$0xff]  ;;  %v268_v7 = vld [vmem:[%s255_s12 + $0x18] sm:$0xff]  ;;  %v320_v45 = vstv %s273_s23  ;;  %s395_s13 = sshll.u32 %s249_s11, 4  ;;  %s918_s14 = scalar_lea.hbm %s976_s4, %s515_s25  ;;  %s920_s13 = int_to_ptr.vmem [resolvable:$true] %s395_s13 }
  0x43   : > { %v267_v8 = vld [vmem:[%s255_s12 + $0x10] sm:$0xff]  ;;  %s623_s26 = scalar_lea.vmem %s920_s13, 1024  ;;  %s711_s27 = smov [#allocation6]  }
  0x44   : > { %p624_p8 = scmp.ne.s32.totalorder %s920_s13, %s623_s26  ;;  %s627_s28 = sshll.u32 %s711_s27, 4  ;;  %s628_s28 = int_to_ptr.vmem [resolvable:$false] %s627_s28 }
  0x45   : > { %s629_s6 = scalar_lea.vmem %s628_s28, 2048  ;;  %p630_p13 = scmp.lt.s32.totalorder %s920_s13, %s628_s28 }
  0x46   : > { %342 = vperm.xlu1 %584, %v266_v5   ;;  %337 = vperm.xlu0 %583, %v265_v6   ;;  %p625_p0 = pnand %p624_p8, %p984_p11  ;;  %p631_p2 = scmp.lt.s32.totalorder %s629_s6, %s623_s26 }
  0x48   : > { %p626_p6 = pneg %p625_p0  ;;  %p632_p5 = por %p631_p2, %p630_p13 }
  0x4a   : > { %352 = vperm.xlu1 %584, %v268_v7   ;;  %347 = vperm.xlu0 %583, %v267_v8   ;;  %p633_p4 = pnand %p632_p5, %p626_p6 }
  0xbd   : > { %v287_v9 = vpop.permute.xlu1 %286  ;;  %v277_v10 = vpop.permute.xlu0 %276 }
  0xbe   : > { %v294_v18 = vmul.f32 %v277_v10, %v884_v11  ;;  %v295_v19 = vmul.f32 %v277_v10, %v887_v12  ;;  %v298_v25 = vmul.f32 %v287_v9, %v896_v15  ;;  %v299_v26 = vmul.f32 %v287_v9, %v899_v16 }
  0xc1   : > { %v282_v17 = vpop.permute.xlu0 %281  ;;  %v292_v22 = vpop.permute.xlu1 %291 }
  0xc2   : > { %v296_v20 = vmul.f32 %v282_v17, %v890_v13  ;;  %v297_v21 = vmul.f32 %v282_v17, %v893_v14  ;;  %v300_v29 = vmul.f32 %v292_v22, %v263_v23  ;;  %v301_v30 = vmul.f32 %v292_v22, %v264_v24 }
  0xc4   : > { %v302_v27 = vadd.f32 %v296_v20, %v294_v18  ;;  %v311_v28 = vadd.f32 %v297_v21, %v295_v19 }
  0xc5   : > { %v343_v56 = vpop.permute.xlu1 %342  ;;  %v338_v57 = vpop.permute.xlu0 %337 }
  0xc6   : > { %v303_v31 = vadd.f32 %v302_v27, %v298_v25  ;;  %v312_v32 = vadd.f32 %v311_v28, %v299_v26 }
  0xc8   : > { %v304_v33 = vadd.f32 %v303_v31, %v300_v29  ;;  %v313_v34 = vadd.f32 %v312_v32, %v301_v30 }
  0xc9   : > { %v353_v59 = vpop.permute.xlu1 %352  ;;  %v348_v60 = vpop.permute.xlu0 %347 }
  0xca   : > { %v305_v35 = vrot.slane %v304_v33, 4  ;;  %v314_v36 = vrot.slane %v313_v34, 4 }
  0xcc   : > { %v306_v37 = vadd.f32 %v305_v35, %v304_v33  ;;  %v315_v38 = vadd.f32 %v314_v36, %v313_v34 }
  0xce   : > { %v307_v39 = vrot.slane %v306_v37, 2  ;;  %v316_v40 = vrot.slane %v315_v38, 2 }
  0xd0   : > { %v308_v41 = vadd.f32 %v307_v39, %v306_v37  ;;  %v317_v42 = vadd.f32 %v316_v40, %v315_v38 }
  0xd2   : > { %v309_v43 = vrot.slane %v308_v41, 1  ;;  %v318_v44 = vrot.slane %v317_v42, 1 }
  0xd4   : > { %v310_v46 = vadd.f32 %v309_v43, %v308_v41  ;;  %v319_v47 = vadd.f32 %v318_v44, %v317_v42 }
  0xd6   : > { %v321_v48 = vadd.f32 %v320_v45, %v310_v46  ;;  %v322_v49 = vadd.f32 %v320_v45, %v319_v47 }
  0xd8   : > { %v506_v50 = vmul.f32 -1.442695, %v321_v48  ;;  %v507_v51 = vmul.f32 -1.442695, %v322_v49 }
  0xda   : > { %585 = vpow2.f32 %v506_v50 }
  0xdb   : > { %587 = vpow2.f32 %v507_v51 }
  0xe4   : > { %v586_v52 = vpop.eup %585 }
  0xe5   : > { %v588_v53 = vpop.eup %587  ;;  %v329_v54 = vadd.f32 1.0, %v586_v52 }
  0xe6   : > { %v330_v55 = vadd.f32 1.0, %v588_v53 }
  0xe7   : > { %589 = vrcp.f32 %v329_v54 }
  0xe8   : > { %591 = vrcp.f32 %v330_v55 }
  0xf1   : > { %v590_v58 = vpop.eup %589 }
  0xf2   : > { %v592_v61 = vpop.eup %591  ;;  %v357_v62 = vadd.f32 %v590_v58, %v343_v56  ;;  %v355_v63 = vadd.f32 %v590_v58, %v338_v57  ;;  %v361_v0 = vadd.f32 %v590_v58, %v353_v59  ;;  %v359_v1 = vadd.f32 %v590_v58, %v348_v60 }
  0xf3   : > { %v358_v2 = vadd.f32 %v592_v61, %v343_v56  ;;  %v356_v3 = vadd.f32 %v592_v61, %v338_v57  ;;  %v362_v4 = vadd.f32 %v592_v61, %v353_v59  ;;  %v360_v5 = vadd.f32 %v592_v61, %v348_v60 }
  0xf4   : > { %v365_v6 = vmul.f32 %v357_v62, %v890_v13  ;;  %v363_v7 = vmul.f32 %v355_v63, %v884_v11  ;;  %v369_v8 = vmul.f32 %v361_v0, %v263_v23  ;;  %v367_v9 = vmul.f32 %v359_v1, %v896_v15 }
  0xf5   : > { %v366_v10 = vmul.f32 %v358_v2, %v893_v14  ;;  %v364_v13 = vmul.f32 %v356_v3, %v887_v12  ;;  %v370_v17 = vmul.f32 %v362_v4, %v264_v24  ;;  %v368_v11 = vmul.f32 %v360_v5, %v899_v16 }
  0xf6   : > { %373 = vst [vmem:[%s249_s11 + $0x10] sm:$0xff] %v365_v6  ;;  %371 = vst [vmem:[%s249_s11] sm:$0xff] %v363_v7 }
  0xf7   : > { %377 = vst [vmem:[%s249_s11 + $0x30] sm:$0xff] %v369_v8  ;;  %375 = vst [vmem:[%s249_s11 + $0x20] sm:$0xff] %v367_v9 }
  0xf8   : > { %374 = vst [vmem:[%s249_s11 + $0x18] sm:$0xff] %v366_v10  ;;  %372 = vst [vmem:[%s249_s11 + $0x8] sm:$0xff] %v364_v13 }
  0xf9   : > { %378 = vst [vmem:[%s249_s11 + $0x38] sm:$0xff] %v370_v17  ;;  %376 = vst [vmem:[%s249_s11 + $0x28] sm:$0xff] %v368_v11 }
  0xfa   : > { %636 = shalt.err (!%p633_p4)
}
  0xfb   : > { %s637_s7 = scalar_lea.hbm %s918_s14, 1024  ;;  %s641_s10 = scalar_lea.hbm %s976_s4, 2048 }
  0xfc   : > { %p638_p7 = scmp.ne.s32.totalorder %s918_s14, %s637_s7  ;;  %p642_p1 = scmp.lt.u32.totalorder %s918_s14, %s976_s4 }
  0xfd   : > { %p643_p3 = scmp.lt.u32.totalorder %s641_s10, %s637_s7  ;;  %p645_p8 = scmp.lt.u32.totalorder %s637_s7, %s918_s14 }
  0xfe   : > { %p639_p10 = pnand %p638_p7, %p984_p11 }
  0xff   : > { %p644_p9 = por %p643_p3, %p642_p1 }
 0x100   : > { %p640_p12 = pneg %p639_p10 }
 0x101   : > { %p646_p0 = por %p645_p8, %p644_p9 }
 0x103   : > { %p647_p6 = pnand %p646_p0, %p640_p12 }
 0x105   : > { %650 = shalt.err (!%p647_p6)
}
 0x106   : > { %s712_s25 = smov 256   ;;  %s713_s11 = smov 16  }
 0x107   : > { %518 = dma.vmem_to_hbm [thread:$0]  (%p984_p11), %s920_s13, 1024, %s918_s14, %s380_s15, %s712_s25, %s712_s25, %s713_s11  }
 0x108 PF: > { %s410_s20 = sand.u32 1, %s685_s17   ;;  %p985_p13 = scmp.ne.s32.totalorder %s981_s5, 0 }
 0x109   : > { %p986_p2 = scmp.ge.s32.totalorder %s705_s22, 2  ;;  %s411_s3 = scalar_lea.sflag [#allocation5], %s410_s20 }
 0x10b   : > { %p525_p5 = pnand %p986_p2, %p985_p13 }
 0x10d   : > { %680 = dma.done.wait (!%p525_p5), %s411_s3, 1024  }
 0x10e   : > { %682 = vsyncadd (!%p525_p5), %s411_s3, 4294966272  ;;  %s21_s22 = sadd.s32 1, %s705_s22   ;;  %s987_s17 = smov %s689_s18 }
 0x10f   : > { %p18_p4 = scmp.ge.s32.totalorder %s21_s22, 4   ;;  %s988_s18 = smov %s693_s19 }
 0x110   : > { %s989_s19 = smov %s798_s30  ;;  %s990_s20 = smov %s701_s21 }
 0x111   : > { %s991_s21 = smov %s993_s24  ;;  %20 = sbr.rel (!%p18_p4) target bundleno = 8 (0x8), region = 84 }
 0x118   :  { %416 = vsyncpa [#allocation4], 1 }
 0x119   :  { %418 = vsyncpa [#allocation4 + $0x1], 1 }
 0x11a   :  { %419 = vsyncpa [#allocation5], 1 }
 0x11b   :  { %421 = vsyncpa [#allocation5 + $0x1], 1 }

</bundles_post_ra>
